<compile_context>
chip_gen: v7x
topology: tpu7x:2x2x1
jax: 0.10.0
libtpu: 0.0.40
codegen_flags: <defaults>
</compile_context>

<pallas_src>
import math

import jax
import jax.numpy as jnp
from jax.experimental import pallas as pl
from jax.experimental.pallas import tpu as pltpu

_EPS = 1e-6  # BERT-pytorch LayerNorm eps (added to std, not var)


def _gelu(x):
    # BERT-pytorch tanh-approximation GELU
    return 0.5 * x * (1.0 + jnp.tanh(
        math.sqrt(2.0 / math.pi) * (x + 0.044715 * x * x * x)))


def _layer_norm(v, g, b, n):
    # matches BERT-pytorch LayerNorm: unbiased std (torch.std), eps on std.
    mean = jnp.mean(v, axis=-1, keepdims=True)
    d = v - mean
    var = jnp.sum(d * d, axis=-1, keepdims=True) / (n - 1.0)
    inv_std = 1.0 / (jnp.sqrt(var) + _EPS)   # per-row reciprocal, not per-element divide
    return g * (d * inv_std) + b


def _pick_vmem_limit_bytes():
    # ~80% of per-core VMEM (headroom for Mosaic internal scratch), capped at
    # 100 MiB (v5e/v6e have 128 MiB, v7x 64 MiB per TC).
    try:
        cap = int(getattr(pltpu.get_tpu_info(), "vmem_capacity_bytes"))
        return min(int(cap * 0.8), 100 * 1024 * 1024)
    except Exception:
        return 48 * 1024 * 1024   # safe on every generation


def _const_spec(a):
    # Full-array resident block, identical for every grid step.  Single-buffer
    # it (constant index map -> double buffering is pure VMEM waste).
    idx = lambda b, qt, _n=a.ndim: (0,) * _n
    if hasattr(pl, "Buffered"):
        try:
            return pl.BlockSpec(a.shape, idx, pipeline_mode=pl.Buffered(1))
        except TypeError:   # older jax without pipeline_mode on BlockSpec
            pass
    return pl.BlockSpec(a.shape, idx)


# ----------------------------- LN1 prologue kernel -----------------------------
def _ln1_kernel(x_ref, g_ref, b_ref, o_ref):
    E = x_ref.shape[-1]
    o_ref[...] = _layer_norm(x_ref[...].astype(jnp.float32),
                             g_ref[...], b_ref[...], E).astype(o_ref.dtype)


def _layer_norm_bf16(x, g, b, *, tq, vmem_limit):
    """LayerNorm(x) once for the whole batch, emitted as a bf16 HBM array."""
    B, T, E = x.shape
    return pl.pallas_call(
        _ln1_kernel,
        out_shape=jax.ShapeDtypeStruct((B, T, E), jnp.bfloat16),
        grid_spec=pltpu.PrefetchScalarGridSpec(
            num_scalar_prefetch=0,
            grid=(B, T // tq),
            in_specs=[
                pl.BlockSpec((None, tq, E), lambda b, qt: (b, qt, 0)),
                _const_spec(g),
                _const_spec(b),
            ],
            out_specs=pl.BlockSpec((None, tq, E), lambda b, qt: (b, qt, 0)),
        ),
        compiler_params=pltpu.CompilerParams(
            dimension_semantics=("parallel", "parallel"),
            vmem_limit_bytes=vmem_limit,
        ),
    )(x, g, b)


# ------------------------------- main block kernel ------------------------------
def transformer_block_kernel(
    xn_ref, x_ref, pm_ref,
    headr_ref, headb_ref,
    wqv_ref, bqv_ref, wpost_ref, bpost_ref,
    ln2_g_ref, ln2_b_ref,
    w1_ref, b1_ref, w2_ref, b2_ref,
    out_ref,
):
    T, E = xn_ref.shape
    tq = out_ref.shape[0]          # query rows handled by this grid step
    W = pm_ref.shape[0] // tq      # attention window size
    H = headr_ref.shape[1]         # number of heads
    f32, bf16 = jnp.float32, jnp.bfloat16

    qt = pl.program_id(1)
    row0 = pl.multiple_of(qt * tq, tq)

    xn_full = xn_ref[...]                          # (T, E)  bf16, LN1(x) from prologue
    xn_tile = xn_ref[pl.ds(row0, tq), :]           # (tq, E) bf16
    x_tile = x_ref[...].astype(f32)                # (tq, E) f32 residual

    # ---- SublayerConnection #1: (hoisted LN1) -> SparseAttention -> residual ----
    # attend_inputs for all W windows of this query tile: one large MXU dot.
    # NOTE: O(W*tq*T*E) — if pos_mask is a 0/1 selection, replace with a
    # scalar-prefetch row gather of LN1(x) rows and drop pm entirely.
    attend = jnp.dot(pm_ref[...], xn_full, preferred_element_type=f32)          # (W*tq, E)

    # Fused key/value projection (key uses query_transform, as in the module).
    kv = jnp.dot(attend.astype(bf16), wqv_ref[...],
                 preferred_element_type=f32) + bqv_ref[...]                      # (W*tq, 2E)
    # Query projection: only the query half (the value half is never used).
    q = jnp.dot(xn_tile, wqv_ref[:, :E],
                preferred_element_type=f32) + bqv_ref[:, :E]                     # (tq, E)

    k3 = kv[:, :E].reshape(W, tq, E)               # (W, tq, E)
    v3 = kv[:, E:].reshape(W, tq, E)               # (W, tq, E)

    # Per-head scores on a lane-compact (W, tq, H) array: the (E, H) 0/1 matmul
    # performs the grouped reduce (head h <- columns e with e % H == h).
    qk = (k3 * q[None, :, :]).reshape(W * tq, E)
    s = jnp.dot(qk.astype(bf16), headr_ref[...],
                preferred_element_type=f32).reshape(W, tq, H)
    s = s * (1.0 / math.sqrt(E))

    # Softmax over the W window positions, per head (d_k x less exp/max/sum
    # work than on E-broadcast scores).  Exact reciprocal on the tiny denom.
    m = jnp.max(s, axis=0, keepdims=True)
    p = jnp.exp(s - m)
    inv_denom = 1.0 / jnp.sum(p, axis=0, keepdims=True)        # (1, tq, H)
    p = p * inv_denom                                          # (W, tq, H)

    # Broadcast probabilities back to E lanes with a 0/1 (H, E) matmul, then
    # contract the W window positions against the values.
    p_full = jnp.dot(p.reshape(W * tq, H).astype(bf16), headb_ref[...],
                     preferred_element_type=f32).reshape(W, tq, E)
    ctx = jnp.sum(p_full * v3, axis=0)                         # (tq, E) f32

    # post_att (columns pre-permuted in the wrapper to absorb the head re-order).
    attn = jnp.dot(ctx.astype(bf16), wpost_ref[...],
                   preferred_element_type=f32) + bpost_ref[...]
    x1 = x_tile + attn

    # ---- SublayerConnection #2: LayerNorm -> PositionwiseFeedForward -> residual ----
    xn2 = _layer_norm(x1, ln2_g_ref[...], ln2_b_ref[...], E)
    h1 = _gelu(jnp.dot(xn2.astype(bf16), w1_ref[...],
                       preferred_element_type=f32) + b1_ref[...])
    ffn = jnp.dot(h1.astype(bf16), w2_ref[...],
                  preferred_element_type=f32) + b2_ref[...]

    # TODO(synk): dropout layers are identity here (inference mode / p = 0.0).
    out_ref[...] = (x1 + ffn).astype(out_ref.dtype)


# ---------------------------------- wrappers ----------------------------------
def prepare_position_mask(pos_mask, tq):
    """pm_tiles[qt, w*tq + r, s] = pos_mask[s, w, qt*tq + r]: the lane-dense
    (W*tq, T) slab a grid step contracts against LN1(x).  The mask is static,
    so call this ONCE and pass the result to transformer_block()."""
    T, W, T2 = pos_mask.shape
    assert T2 == T and T % tq == 0
    n_tiles = T // tq
    return (jnp.transpose(pos_mask, (1, 2, 0))          # (W, T, T): [w, t, s]
            .reshape(W, n_tiles, tq, T)
            .transpose(1, 0, 2, 3)
            .reshape(n_tiles, W * tq, T)
            .astype(jnp.bfloat16))


def transformer_block(x, pos_mask, params, *, q_block=256, pm_tiles=None):
    """TransformerBlock forward.  q_block: sequence tile; v5e/v6e can raise to
    512 where T allows, keep <=256 on v7x (64 MiB VMEM per TensorCore)."""
    B, T, E = x.shape
    W = pos_mask.shape[1]
    H = params["num_heads"]
    assert E % H == 0, "embed_size must be divisible by num_heads"
    d_k = E // H

    tq = T if T <= q_block else q_block
    assert T % tq == 0, "q_block must divide the sequence length"
    if tq < T:
        assert tq % 16 == 0, "sequence tile must be a multiple of 16 (bf16 packing)"
    n_tiles = T // tq

    f32, bf16 = jnp.float32, jnp.bfloat16
    vmem_limit = _pick_vmem_limit_bytes()

    if pm_tiles is None:
        pm_tiles = prepare_position_mask(pos_mask, tq)
    assert pm_tiles.shape == (n_tiles, W * tq, T)

    # LN1(x) once for the whole batch (prologue kernel) -> bf16 HBM operand.
    ln1_g = params["ln1_g"][None, :].astype(f32)
    ln1_b = params["ln1_b"][None, :].astype(f32)
    xn = _layer_norm_bf16(x, ln1_g, ln1_b, tq=tq, vmem_limit=vmem_limit)

    # Fused key/value projection weight: one wide MXU dot instead of 2W small ones.
    wqv = jnp.concatenate([params["w_q"].T, params["w_v"].T], axis=1).astype(bf16)  # (E, 2E)
    bqv = jnp.concatenate([params["b_q"], params["b_v"]])[None, :].astype(f32)      # (1, 2E)

    eidx = jnp.arange(E)
    hidx = jnp.arange(H)
    # Head reduce (E, H) and broadcast (H, E) 0/1 matrices: column e of the
    # projected activations belongs to head e % H (module reshapes E as (d_k, H)).
    headr = ((eidx[:, None] % H) == hidx[None, :]).astype(bf16)   # (E, H)
    headb = (hidx[:, None] == (eidx[None, :] % H)).astype(bf16)   # (H, E)

    # The module concatenates per-head outputs as (H, d_k); permute post_att
    # columns so the kernel consumes ctx in natural (d*H + h) column order.
    perm = (eidx % H) * d_k + (eidx // H)
    wpost = params["w_post"][:, perm].T.astype(bf16)              # (E, E)

    kernel_args = (
        xn, x, pm_tiles,
        headr, headb,
        wqv, bqv,
        wpost, params["b_post"][None, :].astype(f32),
        params["ln2_g"][None, :].astype(f32), params["ln2_b"][None, :].astype(f32),
        params["w1"].T.astype(bf16), params["b1"][None, :].astype(f32),
        params["w2"].T.astype(bf16), params["b2"][None, :].astype(f32),
    )

    in_specs = (
        [
            # LN1(x): full sequence of one batch element (needed by the
            # position-mask contraction), batch dim squeezed out.
            pl.BlockSpec((None, T, E), lambda b, qt: (b, 0, 0)),
            # Residual x: only this query tile.
            pl.BlockSpec((None, tq, E), lambda b, qt: (b, qt, 0)),
            # Position-mask rows for this query tile (all W windows).
            pl.BlockSpec((None, W * tq, T), lambda b, qt: (qt, 0, 0)),
        ]
        + [_const_spec(a) for a in kernel_args[3:]]
    )
    out_spec = pl.BlockSpec((None, tq, E), lambda b, qt: (b, qt, 0))

    return pl.pallas_call(
        transformer_block_kernel,
        out_shape=jax.ShapeDtypeStruct((B, T, E), x.dtype),
        grid_spec=pltpu.PrefetchScalarGridSpec(
            num_scalar_prefetch=0,
            grid=(B, n_tiles),                     # batch x query-tile
            in_specs=in_specs,
            out_specs=out_spec,
        ),
        compiler_params=pltpu.CompilerParams(
            # LN1 is hoisted, so both grid axes are independent -> both
            # megacore-eligible (matters for B == 1 long-sequence inference).
            dimension_semantics=("parallel", "parallel"),
            vmem_limit_bytes=vmem_limit,
        ),
    )(*kernel_args)


# ------------------------- pure-JAX reference (for verification) -------------------------
def _ref_layer_norm(x, g, b):
    mean = jnp.mean(x, axis=-1, keepdims=True)
    std = jnp.std(x, axis=-1, ddof=1, keepdims=True)
    return g * (x - mean) / (std + _EPS) + b


def ref_forward(x, pm, p, H):
    B, T, E = x.shape
    W = pm.shape[1]
    d_k = E // H

    def sparse_attention(xn):
        attend = jnp.einsum('bse,swt->btwe', xn, pm)                 # (B, T, W, E)
        q = xn @ p["w_q"].T + p["b_q"]
        k = attend @ p["w_q"].T + p["b_q"]
        v = attend @ p["w_v"].T + p["b_v"]
        qh = q.reshape(B, T, 1, d_k, H).transpose(0, 4, 1, 2, 3)     # (B, H, T, 1, d_k)
        kh = k.reshape(B, T, W, d_k, H).transpose(0, 4, 1, 2, 3)     # (B, H, T, W, d_k)
        vh = v.reshape(B, T, W, d_k, H).transpose(0, 4, 1, 2, 3)
        scores = jnp.einsum('bhtqd,bhtwd->bhtqw', qh, kh) / math.sqrt(E)
        probs = jax.nn.softmax(scores, axis=-1)
        out = jnp.einsum('bhtqw,bhtwd->bhtqd', probs, vh)            # (B, H, T, 1, d_k)
        out = out[:, :, :, 0, :].transpose(0, 2, 1, 3).reshape(B, T, E)
        return out @ p["w_post"].T + p["b_post"]

    xn = _ref_layer_norm(x, p["ln1_g"], p["ln1_b"])
    x1 = x + sparse_attention(xn)
    xn2 = _ref_layer_norm(x1, p["ln2_g"], p["ln2_b"])
    h = _gelu(xn2 @ p["w1"].T + p["b1"])
    return x1 + (h @ p["w2"].T + p["b2"])


if __name__ == "__main__":
    B, T, E, H, W = 2, 32, 32, 4, 4      # batch, seq, hidden, attn_heads, window
    d_ff = 4 * E
    q_block = 16                          # small tile so the demo exercises multi-tile tiling
    scale = 0.1

    key = jax.random.PRNGKey(0)
    ks = jax.random.split(key, 20)
    params = {
        "num_heads": H,
        "w_q": scale * jax.random.normal(ks[0], (E, E), jnp.float32),
        "b_q": scale * jax.random.normal(ks[1], (E,), jnp.float32),
        "w_v": scale * jax.random.normal(ks[2], (E, E), jnp.float32),
        "b_v": scale * jax.random.normal(ks[3], (E,), jnp.float32),
        "w_post": scale * jax.random.normal(ks[4], (E, E), jnp.float32),
        "b_post": scale * jax.random.normal(ks[5], (E,), jnp.float32),
        "ln1_g": 1.0 + scale * jax.random.normal(ks[6], (E,), jnp.float32),
        "ln1_b": scale * jax.random.normal(ks[7], (E,), jnp.float32),
        "ln2_g": 1.0 + scale * jax.random.normal(ks[8], (E,), jnp.float32),
        "ln2_b": scale * jax.random.normal(ks[9], (E,), jnp.float32),
        "w1": scale * jax.random.normal(ks[10], (d_ff, E), jnp.float32),
        "b1": scale * jax.random.normal(ks[11], (d_ff,), jnp.float32),
        "w2": scale * jax.random.normal(ks[12], (E, d_ff), jnp.float32),
        "b2": scale * jax.random.normal(ks[13], (E,), jnp.float32),
    }

    x = jax.random.normal(ks[14], (B, T, E), jnp.float32)
    pos_mask = jax.random.normal(ks[15], (T, W, T), jnp.float32)

    # Position-mask tiling is static -> prepare ONCE, outside the hot path.
    pm_tiles = prepare_position_mask(pos_mask, tq=q_block)

    out = transformer_block(x, pos_mask, params, q_block=q_block, pm_tiles=pm_tiles)
    out = jax.block_until_ready(out)

    ref = ref_forward(x, pos_mask, params, H)
    # Kernel uses bf16 MXU operands (f32 accumulation); reference is all-f32,
    # hence the relaxed tolerance.
    if not bool(jnp.allclose(out, ref, atol=5e-2, rtol=5e-2)):
        raise AssertionError(
            f"mismatch vs reference, max abs diff = {float(jnp.max(jnp.abs(out - ref)))}")

    print("KERNEL_OK")
</pallas_src>

<mosaic_0001>
module attributes {stable_mosaic.version = 11 : i64} {
  func.func @_ln1_kernel(%arg0: i32, %arg1: i32, %arg2: memref<1x16x32xf32, #tpu.memory_space<vmem>>, %arg3: memref<1x32xf32, #tpu.memory_space<vmem>>, %arg4: memref<1x32xf32, #tpu.memory_space<vmem>>, %arg5: memref<1x16x32xbf16, #tpu.memory_space<vmem>>) attributes {dimension_semantics = [#tpu.dimension_semantics<parallel>, #tpu.dimension_semantics<parallel>], iteration_bounds = array<i64: 2, 2>, scalar_prefetch = 0 : i64, scratch_operands = 0 : i64, tpu.core_type = #tpu.core_type<tc>, window_params = [{transform_indices = @transform_0, window_bounds = array<i64: 1, 16, 32>}, {pipeline_mode = #tpu.pipeline_mode<synchronous>, transform_indices = @transform_1, window_bounds = array<i64: 1, 32>}, {pipeline_mode = #tpu.pipeline_mode<synchronous>, transform_indices = @transform_2, window_bounds = array<i64: 1, 32>}, {transform_indices = @transform_3, window_bounds = array<i64: 1, 16, 32>}]} {
    %c0 = arith.constant 0 : index
    %c0_0 = arith.constant 0 : index
    %c0_1 = arith.constant 0 : index
    %0 = vector.load %arg2[%c0, %c0_0, %c0_1] : memref<1x16x32xf32, #tpu.memory_space<vmem>>, vector<1x16x32xf32>
    %1 = vector.shape_cast %0 : vector<1x16x32xf32> to vector<16x32xf32>
    %c0_2 = arith.constant 0 : index
    %c0_3 = arith.constant 0 : index
    %2 = vector.load %arg3[%c0_2, %c0_3] : memref<1x32xf32, #tpu.memory_space<vmem>>, vector<1x32xf32>
    %c0_4 = arith.constant 0 : index
    %c0_5 = arith.constant 0 : index
    %3 = vector.load %arg4[%c0_4, %c0_5] : memref<1x32xf32, #tpu.memory_space<vmem>>, vector<1x32xf32>
    %cst = arith.constant dense<0.000000e+00> : vector<16xf32>
    %4 = vector.multi_reduction <add>, %1, %cst [1] : vector<16x32xf32> to vector<16xf32>
    %5 = vector.shape_cast %4 : vector<16xf32> to vector<16x1xf32>
    %cst_6 = arith.constant 3.200000e+01 : f32
    %6 = vector.broadcast %cst_6 : f32 to vector<16x1xf32>
    %7 = arith.divf %5, %6 : vector<16x1xf32>
    %8 = vector.broadcast %7 : vector<16x1xf32> to vector<16x32xf32>
    %9 = arith.subf %1, %8 : vector<16x32xf32>
    %10 = arith.mulf %9, %9 : vector<16x32xf32>
    %cst_7 = arith.constant dense<0.000000e+00> : vector<16xf32>
    %11 = vector.multi_reduction <add>, %10, %cst_7 [1] : vector<16x32xf32> to vector<16xf32>
    %12 = vector.shape_cast %11 : vector<16xf32> to vector<16x1xf32>
    %cst_8 = arith.constant 3.100000e+01 : f32
    %13 = vector.broadcast %cst_8 : f32 to vector<16x1xf32>
    %14 = arith.divf %12, %13 : vector<16x1xf32>
    %15 = math.sqrt %14 : vector<16x1xf32>
    %cst_9 = arith.constant 9.99999997E-7 : f32
    %16 = vector.broadcast %cst_9 : f32 to vector<16x1xf32>
    %17 = arith.addf %15, %16 : vector<16x1xf32>
    %cst_10 = arith.constant 1.000000e+00 : f32
    %18 = vector.broadcast %cst_10 : f32 to vector<16x1xf32>
    %19 = arith.divf %18, %17 : vector<16x1xf32>
    %20 = vector.broadcast %19 : vector<16x1xf32> to vector<16x32xf32>
    %21 = arith.mulf %9, %20 : vector<16x32xf32>
    %22 = vector.broadcast %2 : vector<1x32xf32> to vector<16x32xf32>
    %23 = arith.mulf %22, %21 : vector<16x32xf32>
    %24 = vector.broadcast %3 : vector<1x32xf32> to vector<16x32xf32>
    %25 = arith.addf %23, %24 : vector<16x32xf32>
    %26 = arith.truncf %25 : vector<16x32xf32> to vector<16x32xbf16>
    %c0_11 = arith.constant 0 : index
    %c0_12 = arith.constant 0 : index
    %c0_13 = arith.constant 0 : index
    %27 = vector.load %arg5[%c0_11, %c0_12, %c0_13] : memref<1x16x32xbf16, #tpu.memory_space<vmem>>, vector<1x16x32xbf16>
    %28 = vector.shape_cast %27 : vector<1x16x32xbf16> to vector<16x32xbf16>
    %29 = vector.shape_cast %26 : vector<16x32xbf16> to vector<1x16x32xbf16>
    tpu.vector_store %arg5[%c0_11, %c0_12, %c0_13], %29 {strides = array<i32>} : memref<1x16x32xbf16, #tpu.memory_space<vmem>>, vector<1x16x32xbf16>,
    return
  }
  func.func @transform_0(%arg0: i32, %arg1: i32) -> (i32, i32, i32) {
    %c0_i32 = arith.constant 0 : i32
    %c0_i32_0 = arith.constant 0 : i32
    return %arg0, %arg1, %c0_i32 : i32, i32, i32
  }
  func.func @transform_1(%arg0: i32, %arg1: i32) -> (i32, i32) {
    %c0_i32 = arith.constant 0 : i32
    %c0_i32_0 = arith.constant 0 : i32
    %c0_i32_1 = arith.constant 0 : i32
    return %c0_i32, %c0_i32_0 : i32, i32
  }
  func.func @transform_2(%arg0: i32, %arg1: i32) -> (i32, i32) {
    %c0_i32 = arith.constant 0 : i32
    %c0_i32_0 = arith.constant 0 : i32
    %c0_i32_1 = arith.constant 0 : i32
    return %c0_i32, %c0_i32_0 : i32, i32
  }
  func.func @transform_3(%arg0: i32, %arg1: i32) -> (i32, i32, i32) {
    %c0_i32 = arith.constant 0 : i32
    %c0_i32_0 = arith.constant 0 : i32
    return %arg0, %arg1, %c0_i32 : i32, i32, i32
  }
}

</mosaic_0001>

<bundles_post_ra>
// kernel: tpu_custom_call.1
= control target key start
LH: loop header
LB: loop body
LE: loop exit
PB: predicated region body
PF: predicated region fallthrough
CT: control target
= control target key end

     0   :  { %8 = vsyncpa [#allocation3], 0  ;;  %s866_s0 = inlined_call_operand.hbm [shape: f32[2,32,32], index: 0, kind: input, shape index: {}]   ;;  %s867_s1 = inlined_call_operand.vmem [shape: f32[1,32], index: 1, kind: input, shape index: {}]   ;;  %s868_s2 = inlined_call_operand.vmem [shape: f32[1,32], index: 2, kind: input, shape index: {}]   ;;  %s869_s3 = inlined_call_operand.hbm [shape: bf16[2,32,32], index: 3, kind: output, shape index: {}]  }
   0x1   :  { %10 = vsyncpa [#allocation3 + $0x1], 0 }
   0x2   :  { %11 = vsyncpa [#allocation4], 0 }
   0x3   :  { %13 = vsyncpa [#allocation4 + $0x1], 0  ;;  %s660_s12 = smov 0   ;;  %s662_s13 = smov 0  }
   0x4   :  { %s664_s14 = smov 0   ;;  %s666_s15 = smov 0  }
   0x5   :  { %s668_s16 = smov 0   ;;  %s670_s17 = smov 0  }
   0x6   :  { %s672_s18 = smov 0   ;;  %s674_s19 = smov 0  }
   0x7 LB: > { %s391_s20 = sadd.s32 4294967295, %s632_s19   ;;  %s392_s21 = sadd.s32 4294967294, %s632_s19   ;;  %s632_s19 = sphi %s674_s19, %s19_s19   ;;  %s628_s18 = sphi %s672_s18, %s887_s18   ;;  %s624_s17 = sphi %s670_s17, %s886_s17   ;;  %s620_s16 = sphi %s668_s16, %s885_s16   ;;  %s616_s15 = sphi %s666_s15, %s884_s15   ;;  %s612_s14 = sphi %s664_s14, %s883_s14   ;;  %s608_s13 = sphi %s662_s13, %s882_s13   ;;  %s604_s12 = sphi %s660_s12, %s881_s12  }
   0x8   : > { %s28_s22 = sadd.s32 1, %s624_s17  ;;  %s31_s23 = sadd.s32 1, %s628_s18 }
   0x9   : > { %p29_p0 = scmp.ge.s32.totalorder %s28_s22, 2  ;;  %s40_s24 = sadd.s32 1, %s612_s14 }
   0xa   : > { %p47_p1 = scmp.ne.s32.totalorder %s612_s14, %s608_s13  ;;  %p48_p2 = scmp.eq.s32.totalorder %s632_s19, 0 }
   0xb   : > { %s889_s22 = smov (%p29_p0, %s28_s22), 0  ;;  %s891_s23 = smov (!%p29_p0, %s31_s23), %s628_s18 }
   0xc   : > { %s36_s25 = ssub.s32 %s624_s17, %s889_s22  ;;  %p713_p3 = por %p48_p2, %p47_p1 }
   0xd   : > { %p33_p4 = scmp.ge.s32.totalorder %s891_s23, 2  ;;  %p53_p5 = scmp.ne.s32.totalorder %s608_s13, %s604_s12 }
   0xe   : > { %p54_p6 = scmp.eq.s32.totalorder %s391_s20, 0  ;;  %p121_p7 = scmp.eq.s32.totalorder %s391_s20, 3 }
   0xf   : > { %s893_s23 = smov (%p33_p4, %s891_s23), 0  ;;  %p127_p10 = scmp.eq.s32.totalorder %s392_s21, 3 }
  0x10   : > { %873 = sst [smem:[#allocation8_spill]] %s893_s23  ;;  %p721_p8 = por %p54_p6, %p53_p5 }
  0x11   : > { %p725_p9 = por %p121_p7, %p47_p1  ;;  %s35_s29 = ssub.s32 %s628_s18, %s893_s23 }
  0x12   : > { %s37_s30 = sor.u32 %s36_s25, %s35_s29  ;;  %p731_p12 = por %p127_p10, %p53_p5 }
  0x13   : > { %s875_s28 = scalar_select %p725_p9, 1, 0 }
  0x14   : > { %p38_p11 = scmp.eq.s32.totalorder %s37_s30, 0  ;;  %p426_p13 = scmp.lt.s32.totalorder %s632_s19, 4 }
  0x15   : > { %s876_s4 = scalar_select %p731_p12, 1, 0 }
  0x16   : > { %s153_s5 = sand.u32 1, %s612_s14   ;;  %s396_s8 = sshll.u32 %s624_s17, 1 }
  0x17   : > { %s738_s6 = scalar_select %p38_p11, %s612_s14, %s40_s24  }
  0x18   : > { %s395_s7 = sshll.u32 %s153_s5, 4  ;;  %s397_s9 = sshll.u32 %s628_s18, 2 }
  0x19   : > { %s157_s10 = scalar_lea.vmem [#allocation2], %s395_s7  ;;  %s163_s20 = sadd.s32 %s397_s9, %s396_s8 }
  0x1a   : > { %s166_s11 = sshll.u32 %s157_s10, 4  ;;  %s398_s23 = sshll.u32 %s163_s20, 7  ;;  %s742_s11 = int_to_ptr.vmem [resolvable:$true] %s166_s11 }
  0x1b   : > { %p746_p0 = pnand %p426_p13, %p713_p3  ;;  %s753_s24 = scalar_lea.hbm %s866_s0, %s398_s23 }
  0x1c   : > { %s755_s30 = scalar_lea.sflag [#allocation3], %s153_s5  ;;  %s504_s7 = scalar_lea.hbm %s753_s24, 256 }
  0x1d   : > { %p505_p1 = scmp.ne.s32.totalorder %s753_s24, %s504_s7  ;;  %p506_p2 = pneg %p746_p0 }
  0x1e   : > { %s509_s9 = scalar_lea.hbm %s866_s0, 1024  ;;  %p510_p5 = scmp.lt.u32.totalorder %s753_s24, %s866_s0 }
  0x1f   : > { %p507_p3 = pnand %p506_p2, %p505_p1  ;;  %p511_p6 = scmp.lt.u32.totalorder %s509_s9, %s504_s7 }
  0x20   : > { %p513_p10 = scmp.lt.u32.totalorder %s504_s7, %s753_s24 }
  0x21   : > { %p508_p4 = pneg %p507_p3  ;;  %p512_p7 = por %p511_p6, %p510_p5 }
  0x23   : > { %p514_p11 = por %p513_p10, %p512_p7 }
  0x25   : > { %p515_p13 = pnand %p514_p11, %p508_p4 }
  0x27   : > { %518 = shalt.err (!%p515_p13)
}
  0x28   : > { %s519_s5 = scalar_lea.vmem %s742_s11, 256  ;;  %s634_s20 = smov [#allocation2]  }
  0x29   : > { %p520_p1 = scmp.ne.s32.totalorder %s742_s11, %s519_s5  ;;  %s524_s25 = sshll.u32 %s634_s20, 4  ;;  %s525_s25 = int_to_ptr.vmem [resolvable:$false] %s524_s25 }
  0x2a   : > { %s526_s29 = scalar_lea.vmem %s525_s25, 512  ;;  %p527_p9 = scmp.lt.s32.totalorder %s742_s11, %s525_s25 }
  0x2b   : > { %p522_p3 = pnand %p520_p1, %p506_p2  ;;  %p528_p5 = scmp.lt.s32.totalorder %s526_s29, %s519_s5 }
  0x2d   : > { %p523_p12 = pneg %p522_p3  ;;  %p529_p6 = por %p528_p5, %p527_p9 }
  0x2f   : > { %p530_p7 = pnand %p529_p6, %p523_p12 }
  0x31   : > { %533 = shalt.err (!%p530_p7)
}
  0x32   : > { %s635_s7 = smov 128   ;;  %s636_s26 = smov 8  }
  0x33   : > { %421 = dma.hbm_to_vmem [thread:$0]  (!%p746_p0), %s753_s24, 256, %s742_s11, %s755_s30, %s635_s7, %s635_s7, %s636_s26  }
  0x34   : > { %p399_p2 = scmp.ge.s32.totalorder %s632_s19, 1  ;;  %p174_p4 = scmp.lt.s32.totalorder %s632_s19, 5 }
  0x36   : > { %p175_p10 = pnand %p399_p2, %p174_p4 }
  0x37   : > { %s786_s8 = sand.u32 (!%p175_p10), 1, %s608_s13  }
  0x38   : > { %178 = sbr.rel (%p175_p10) target bundleno = 414 (0x19e), region = 32  ;;  %s400_s9 = sshll.u32 (!%p175_p10), %s786_s8, 4 }
  0x39   : > { %s181_s23 = scalar_lea.sflag (!%p175_p10), [#allocation3], %s786_s8  ;;  %s184_s10 = scalar_lea.vmem (!%p175_p10), [#allocation2], %s400_s9 }
  0x3f   : > { %595 = dma.done.wait (%p721_p8), %s181_s23, 256  }
  0x40   : > { %597 = vsyncadd (%p721_p8), %s181_s23, 4294967040  ;;  %vm213_vm0 = vcmask 261120   ;;  %v209_v0 = vld [vmem:[%s184_s10] sm:$0xff]  ;;  %v210_v1 = vld [vmem:[%s184_s10 + $0x8] sm:$0xff]  ;;  %s407_s21 = sshll.u32 %s616_s15, 1  ;;  %s408_s24 = sshll.u32 %s620_s16, 2 }
  0x41   : > { %v214_v2 = vsel %vm213_vm0, %v209_v0, 0.0  ;;  %v217_v3 = vsel %vm213_vm0, %v210_v1, 0.0  ;;  %v402_v31 = vld [vmem:[%s867_s1] ss:$0 sm:$0xff]  ;;  %s401_s20 = sshll.u32 %s786_s8, 3  ;;  %s298_s25 = sadd.s32 %s408_s24, %s407_s21  ;;  %vm282_vm5 = vcmask 257024  }
  0x42   : > { %215 = vadd.xlane.f32.xlu0 %v214_v2  ;;  %v403_v33 = vld [vmem:[%s868_s2] ss:$0 sm:$0xff]  ;;  %s409_s29 = sshll.u32 %s298_s25, 6  ;;  %s206_s7 = scalar_lea.vmem [#allocation5], %s401_s20 }
  0x43   : > { %s301_s26 = sshll.u32 %s206_s7, 4  ;;  %s810_s9 = scalar_lea.hbm %s869_s3, %s409_s29  ;;  %s812_s26 = int_to_ptr.vmem [resolvable:$true] %s301_s26 }
  0x44   : > { %s286_s23 = scalar_lea.sflag [#allocation4], %s786_s8  ;;  %s534_s10 = scalar_lea.vmem %s812_s26, 128 }
  0x45   : > { %p535_p8 = scmp.ne.s32.totalorder %s812_s26, %s534_s10  ;;  %p878_p9 = scmp.ne.s32.totalorder %s875_s28, 0 }
  0x46   : > { %218 = vadd.xlane.f32.xlu0 %v217_v3  ;;  %s637_s27 = smov [#allocation5]  }
  0x47   : > { %p536_p12 = pnand %p535_p8, %p878_p9  ;;  %s538_s11 = sshll.u32 %s637_s27, 4  ;;  %s539_s11 = int_to_ptr.vmem [resolvable:$false] %s538_s11 }
  0x48   : > { %s540_s21 = scalar_lea.vmem %s539_s11, 256  ;;  %p541_p11 = scmp.lt.s32.totalorder %s812_s26, %s539_s11 }
  0x49   : > { %p537_p0 = pneg %p536_p12  ;;  %p542_p13 = scmp.lt.s32.totalorder %s540_s21, %s534_s10 }
  0x4b   : > { %p543_p1 = por %p542_p13, %p541_p11 }
  0x4d   : > { %p544_p3 = pnand %p543_p1, %p537_p0 }
  0xcf   : > { %v216_v4 = vpop.xlane.xlu0 %215 }
  0xd0   : > { %v221_v5 = vmul.f32 0.03125, %v216_v4 }
  0xd2   : > { %v223_v6 = vsub.f32 %v209_v0, %v221_v5 }
  0xd3   : > { %v219_v7 = vpop.xlane.xlu0 %218 }
  0xd4   : > { %v222_v8 = vmul.f32 0.03125, %v219_v7  ;;  %v225_v9 = vmul.f32 %v223_v6, %v223_v6 }
  0xd6   : > { %v224_v10 = vsub.f32 %v210_v1, %v222_v8  ;;  %v227_v11 = vsel %vm213_vm0, %v225_v9, 0.0 }
  0xd7   : > { %228 = vadd.xlane.f32.xlu1 %v227_v11 }
  0xd8   : > { %v226_v12 = vmul.f32 %v224_v10, %v224_v10 }
  0xda   : > { %v230_v13 = vsel %vm213_vm0, %v226_v12, 0.0 }
  0xdb   : > { %231 = vadd.xlane.f32.xlu1 %v230_v13 }
 0x164   : > { %v229_v14 = vpop.xlane.xlu1 %228 }
 0x165   : > { %v234_v15 = vmul.f32 0.032258064, %v229_v14 }
 0x167   : > { %496 = vrsqrt.f32 %v234_v15  ;;  %vm238_vm1 = vcmp.eq.f32.partialorder %v234_v15, inf  ;;  %v241_v20 = vand.u32 2147483648, %v234_v15  ;;  %vm240_vm2 = vcmp.eq.f32.partialorder %v234_v15, 0.0 }
 0x168   : > { %v232_v16 = vpop.xlane.xlu1 %231 }
 0x169   : > { %v235_v17 = vmul.f32 0.032258064, %v232_v16 }
 0x16b   : > { %498 = vrsqrt.f32 %v235_v17  ;;  %vm245_vm3 = vcmp.eq.f32.partialorder %v235_v17, inf  ;;  %v248_v26 = vand.u32 2147483648, %v235_v17  ;;  %vm247_vm4 = vcmp.eq.f32.partialorder %v235_v17, 0.0 }
 0x171   : > { %v497_v18 = vpop.eup %496 }
 0x172   : > { %v237_v19 = vmul.f32 %v497_v18, %v234_v15 }
 0x174   : > { %v239_v21 = vsel %vm238_vm1, %v234_v15, %v237_v19 }
 0x175   : > { %v499_v22 = vpop.eup %498  ;;  %v242_v23 = vsel %vm240_vm2, %v241_v20, %v239_v21 }
 0x176   : > { %v250_v24 = vadd.f32 1e-06, %v242_v23  ;;  %v244_v25 = vmul.f32 %v499_v22, %v235_v17 }
 0x178   : > { %500 = vrcp.f32 %v250_v24  ;;  %v246_v27 = vsel %vm245_vm3, %v235_v17, %v244_v25 }
 0x179   : > { %v249_v28 = vsel %vm247_vm4, %v248_v26, %v246_v27 }
 0x17a   : > { %v251_v29 = vadd.f32 1e-06, %v249_v28 }
 0x17c   : > { %502 = vrcp.f32 %v251_v29 }
 0x182   : > { %v501_v30 = vpop.eup %500 }
 0x183   : > { %v256_v32 = vmul.f32 %v501_v30, %v223_v6 }
 0x185   : > { %v264_v34 = vmul.f32 %v402_v31, %v256_v32 }
 0x186   : > { %v503_v35 = vpop.eup %502 }
 0x187   : > { %v257_v36 = vmul.f32 %v503_v35, %v224_v10  ;;  %v272_v37 = vadd.f32 %v403_v33, %v264_v34 }
 0x189   : > { %v265_v38 = vmul.f32 %v402_v31, %v257_v36  ;;  %v412_v39 = vpack.c.bf16 %v272_v37, %v272_v37 }
 0x18b   : > { %v273_v40 = vadd.f32 %v403_v33, %v265_v38  ;;  %283 = vst.msk [vmem:[%s206_s7] sm:$0xf] %vm282_vm5, %v412_v39 }
 0x18d   : > { %v413_v41 = vpack.c.bf16 %v273_v40, %v273_v40 }
 0x18f   : > { %284 = vst.msk [vmem:[%s206_s7 + $0x4] sm:$0xf] %vm282_vm5, %v413_v41 }
 0x190   : > { %547 = shalt.err (!%p544_p3)
}
 0x191   : > { %s548_s24 = scalar_lea.hbm %s810_s9, 128  ;;  %s552_s20 = scalar_lea.hbm %s869_s3, 512 }
 0x192   : > { %p549_p5 = scmp.ne.s32.totalorder %s810_s9, %s548_s24  ;;  %p553_p2 = scmp.lt.u32.totalorder %s810_s9, %s869_s3 }
 0x193   : > { %p554_p4 = scmp.lt.u32.totalorder %s552_s20, %s548_s24  ;;  %p556_p8 = scmp.lt.u32.totalorder %s548_s24, %s810_s9 }
 0x194   : > { %p550_p6 = pnand %p549_p5, %p878_p9 }
 0x195   : > { %p555_p10 = por %p554_p4, %p553_p2 }
 0x196   : > { %p551_p7 = pneg %p550_p6 }
 0x197   : > { %p557_p12 = por %p556_p8, %p555_p10 }
 0x199   : > { %p558_p0 = pnand %p557_p12, %p551_p7 }
 0x19b   : > { %561 = shalt.err (!%p558_p0)
}
 0x19c   : > { %s638_s7 = smov 64   ;;  %s639_s15 = smov 4  }
 0x19d   : > { %416 = dma.vmem_to_hbm [thread:$0]  (%p878_p9), %s812_s26, 128, %s810_s9, %s286_s23, %s638_s7, %s638_s7, %s639_s15  }
 0x19e PF: > { %p427_p11 = scmp.ge.s32.totalorder %s632_s19, 2  ;;  %s316_s16 = sand.u32 1, %s604_s12  }
 0x19f   : > { %p879_p13 = scmp.ne.s32.totalorder %s876_s4, 0  ;;  %s317_s10 = scalar_lea.sflag [#allocation4], %s316_s16 }
 0x1a1   : > { %p423_p1 = pnand %p427_p11, %p879_p13 }
 0x1a3   : > { %599 = dma.done.wait (!%p423_p1), %s317_s10, 128  }
 0x1a4   : > { %601 = vsyncadd (!%p423_p1), %s317_s10, 4294967168  ;;  %s19_s19 = sadd.s32 1, %s632_s19   ;;  %s880_s28 = sld [smem:[#allocation8_spill]] }
 0x1a5   : > { %p16_p3 = scmp.ge.s32.totalorder %s19_s19, 6   ;;  %s881_s12 = smov %s608_s13 }
 0x1a6   : > { %s882_s13 = smov %s612_s14  ;;  %s883_s14 = smov %s738_s6 }
 0x1a7   : > { %s884_s15 = smov %s624_s17  ;;  %s885_s16 = smov %s628_s18 }
 0x1a8   : > { %s886_s17 = smov %s889_s22  ;;  %18 = sbr.rel (!%p16_p3) target bundleno = 7 (0x7), region = 77 }
 0x1aa   : > { %s887_s18 = smov %s880_s28 }
 0x1af   :  { %322 = vsyncpa [#allocation3], 1 }
 0x1b0   :  { %324 = vsyncpa [#allocation3 + $0x1], 1 }
 0x1b1   :  { %325 = vsyncpa [#allocation4], 1 }
 0x1b2   :  { %327 = vsyncpa [#allocation4 + $0x1], 1 }

</bundles_post_ra>
